<compile_context>
chip_gen: v7x
topology: tpu7x:2x2x1
jax: 0.10.0
libtpu: 0.0.40
codegen_flags: <defaults>
</compile_context>

<pallas_src>
import warnings

import jax
import jax.numpy as jnp
from jax.experimental import pallas as pl
from jax.experimental.pallas import tpu as pltpu


class NumericalWarning(RuntimeWarning):
    """Stand-in for gpytorch.utils.warnings.NumericalWarning."""


# gpytorch settings.min_fixed_noise defaults per dtype
_MIN_FIXED_NOISE = {
    jnp.dtype(jnp.float64): 1e-6,
    jnp.dtype(jnp.float32): 1e-4,
    jnp.dtype(jnp.bfloat16): 1e-3,   # gpytorch "half" value; bf16 rounds ~exactly
    jnp.dtype(jnp.float16): 1e-3,
}
MIN_FIXED_NOISE_F32 = 1e-4

_MAX_SINGLE_BLOCK_N = 1024   # (1024, 1024) f32 = 4 MiB -> use one grid step
_DEFAULT_TILE = 1024         # large lane-dense square tiles for big N


def _diag_block_kernel(noise_ref, out_ref):
    """Write one square (T, T) block of diag(noise).

    noise_ref : full flattened (1, N_pad) noise, VMEM-resident (no blocking).
    out_ref   : (T, T) output block at grid position (i, j).
    Off-diagonal blocks only store zeros; diagonal blocks build a block-local
    identity mask (no global offsets needed since blocks are square).
    """
    i = pl.program_id(0)
    j = pl.program_id(1)
    tm, tn = out_ref.shape  # static Python ints; tm == tn (square blocks)

    @pl.when(i != j)
    def _off_diag():
        out_ref[...] = jnp.zeros(out_ref.shape, out_ref.dtype)

    @pl.when(i == j)
    def _on_diag():
        start = pl.multiple_of(i * tn, tn)
        d = noise_ref[:, pl.ds(start, tn)]                     # (1, tn), lane-oriented
        row = jax.lax.broadcasted_iota(jnp.int32, (tm, tn), 0)
        col = jax.lax.broadcasted_iota(jnp.int32, (tm, tn), 1)
        eye = row == col
        # out[r, c] = d[c] where r == c  (equals d[r] on the diagonal), so the
        # lane-oriented row broadcast avoids any lane->sublane transpose.
        out_ref[...] = jnp.where(eye, d, jnp.zeros((), d.dtype)).astype(out_ref.dtype)


def diag_covariance_from_diag(diag_flat: jax.Array, *, block=None, out_dtype=None) -> jax.Array:
    """Materialize diag(diag_flat) as a dense (N, N) matrix via Pallas."""
    diag_flat = jnp.asarray(diag_flat).reshape(-1)
    N = int(diag_flat.shape[0])
    out_dtype = jnp.dtype(diag_flat.dtype if out_dtype is None else out_dtype)

    # Tile selection: one (N, N) block for small N; big lane-dense square
    # tiles otherwise (4 MiB/buffer f32 -> fits v5e/v6e/v7x scoped VMEM).
    if block is None:
        block = N if N <= _MAX_SINGLE_BLOCK_N else _DEFAULT_TILE
    if int(block) >= N:
        tile = N                                    # block equal to full dims: always legal
    else:
        tile = max(128, (int(block) // 128) * 128)  # lane-dense, (8,128)-legal

    grid_m = pl.cdiv(N, tile)
    n_pad = grid_m * tile
    noise_row = diag_flat
    if n_pad != N:
        # Pad only the tiny O(N) noise vector so in-kernel pl.ds never goes OOB;
        # the padded columns land in the (discarded) padded part of edge blocks.
        noise_row = jnp.pad(diag_flat, (0, n_pad - N))
    noise_row = noise_row.reshape(1, n_pad)

    return pl.pallas_call(
        _diag_block_kernel,
        out_shape=jax.ShapeDtypeStruct((N, N), out_dtype),
        grid_spec=pltpu.PrefetchScalarGridSpec(
            num_scalar_prefetch=0,
            grid=(grid_m, grid_m),
            # Tiny noise vector: fully VMEM-resident, no per-block DMA.
            in_specs=[pl.BlockSpec(memory_space=pltpu.MemorySpace.VMEM)],
            out_specs=pl.BlockSpec((tile, tile), lambda i, j: (i, j)),
        ),
        compiler_params=pltpu.CompilerParams(
            dimension_semantics=("parallel", "parallel"),
            vmem_limit_bytes=32 * 1024 * 1024,
        ),
    )(noise_row)


class DiagLinearOperator:
    """Minimal stand-in for linear_operator.DiagLinearOperator.

    Stores only the O(N) diagonal; densification (the Pallas hot path) is
    opt-in via to_dense().
    """

    def __init__(self, diag: jax.Array):
        # TODO(synk): gpytorch keeps leading batch dims as operator batch dims;
        # here multi-dim diagonals are flattened.
        self._diag = jnp.asarray(diag).reshape(-1)

    @property
    def shape(self):
        n = int(self._diag.shape[0])
        return (n, n)

    def diagonal(self) -> jax.Array:
        return self._diag

    def matmul(self, rhs: jax.Array) -> jax.Array:
        # O(N * k) -- never densify for a diag @ rhs product.
        return self._diag[:, None] * rhs

    def to_dense(self, *, block=None, out_dtype=None) -> jax.Array:
        return diag_covariance_from_diag(self._diag, block=block, out_dtype=out_dtype)


class ZeroLinearOperator:
    """Minimal stand-in for linear_operator.ZeroLinearOperator."""

    def to_dense(self, shape=None, dtype=jnp.float32) -> jax.Array:
        # TODO(synk): gpytorch's ZeroLinearOperator carries lazy shape info;
        # here the caller must supply it to densify.
        if shape is None:
            return jnp.zeros((0, 0), dtype=dtype)
        return jnp.zeros(shape, dtype=dtype)


class MultitaskFixedGaussianNoise:
    """JAX/Pallas port of the PyTorch MultitaskFixedGaussianNoise module."""

    def __init__(self, noise: jax.Array, num_tasks: int = 1):
        noise = jnp.asarray(noise)
        min_noise = _MIN_FIXED_NOISE.get(jnp.dtype(noise.dtype), 1e-4)
        if bool(jnp.any(noise < min_noise)):
            warnings.warn(
                "Very small noise values detected. This will likely lead to "
                f"numerical instabilities. Rounding small noise values up to {min_noise}.",
                NumericalWarning,
            )
            noise = jnp.maximum(noise, jnp.asarray(min_noise, dtype=noise.dtype))
        self.noise = noise          # clamped at construction, like gpytorch
        self.num_tasks = num_tasks

    def __call__(self, *params, shape=None, noise=None, **kwargs):
        return self.forward(*params, shape=shape, noise=noise, **kwargs)

    def forward(self, *params, shape=None, noise=None, **kwargs):
        if shape is None:
            p = params[0] if not isinstance(params[0], (list, tuple)) else params[0][0]
            shape = p.shape if len(p.shape) == 1 else p.shape[:-1]
        shape = tuple(shape)

        if noise is not None:
            return DiagLinearOperator(noise)

        flat = self.noise.reshape(-1)
        if shape == tuple(flat.shape):
            return DiagLinearOperator(flat)
        elif len(shape) >= 2 and shape[-2] == self.noise.shape[-2]:
            return DiagLinearOperator(flat)
        else:
            return ZeroLinearOperator()


if __name__ == "__main__":
    key = jax.random.PRNGKey(0)
    k_noise, k_p, k_c, k_d = jax.random.split(key, 4)

    num_data, num_tasks = 32, 8
    N = num_data * num_tasks  # 256

    noise = jax.random.uniform(k_noise, (num_data, num_tasks),
                               dtype=jnp.float32, minval=0.05, maxval=0.5)
    # a couple of tiny values to exercise the clamp + warning path
    noise = noise.at[0, 0].set(1e-7).at[3, 5].set(1e-6)

    with warnings.catch_warnings(record=True) as caught:
        warnings.simplefilter("always")
        lik = MultitaskFixedGaussianNoise(noise, num_tasks=num_tasks)
    assert any("noise values" in str(w.message) for w in caught)

    ref_diag = jnp.maximum(noise.reshape(-1), MIN_FIXED_NOISE_F32)
    assert jnp.array_equal(lik.noise.reshape(-1), ref_diag)   # clamp at __init__

    p = jax.random.normal(k_p, (N,), dtype=jnp.float32)
    op = lik(p)
    assert isinstance(op, DiagLinearOperator) and op.shape == (N, N)

    dense_ref = jnp.diag(ref_diag)

    # (A) auto tiling: single (N, N) block, grid (1, 1)
    cov_a = jax.block_until_ready(op.to_dense())
    assert cov_a.shape == (N, N) and cov_a.dtype == jnp.float32
    assert jnp.array_equal(cov_a, dense_ref)

    # (B) forced multi-block tiling (grid 2x2) -> exercises pl.when diag gating
    cov_b = jax.block_until_ready(op.to_dense(block=128))
    assert jnp.array_equal(cov_b, dense_ref)

    # (B2) bf16 output (halved store traffic option)
    cov_bf = jax.block_until_ready(op.to_dense(out_dtype=jnp.bfloat16))
    assert cov_bf.dtype == jnp.bfloat16
    assert jnp.array_equal(cov_bf, dense_ref.astype(jnp.bfloat16))

    # (C) N not a multiple of 128 (50 x 3 = 150): single full-extent block
    noise_c = jax.random.uniform(k_c, (50, 3), dtype=jnp.float32, minval=0.1, maxval=0.4)
    lik_c = MultitaskFixedGaussianNoise(noise_c, num_tasks=3)
    op_c = lik_c(jnp.ones((150,), jnp.float32))
    cov_c = jax.block_until_ready(op_c.to_dense())
    assert cov_c.shape == (150, 150)
    assert jnp.array_equal(cov_c, jnp.diag(noise_c.reshape(-1)))

    # (C2) multi-block tiling with N NOT a multiple of the tile
    #      (60 x 5 = 300, tile 128 -> grid 3x3, padded noise + partial edge blocks)
    noise_d = jax.random.uniform(k_d, (60, 5), dtype=jnp.float32, minval=0.1, maxval=0.4)
    lik_d = MultitaskFixedGaussianNoise(noise_d, num_tasks=5)
    op_d = lik_d(jnp.ones((300,), jnp.float32))
    cov_d = jax.block_until_ready(op_d.to_dense(block=128))
    assert cov_d.shape == (300, 300)
    assert jnp.array_equal(cov_d, jnp.diag(noise_d.reshape(-1)))

    # (D) explicit noise= override branch
    op_n = lik(p, noise=ref_diag * 2.0)
    cov_n = jax.block_until_ready(op_n.to_dense())
    assert jnp.array_equal(jnp.diagonal(cov_n), ref_diag * 2.0)

    # (E) shape[-2] match branch and ZeroLinearOperator branch
    op_m = lik(jnp.ones((num_data, num_tasks, 3), jnp.float32))
    assert isinstance(op_m, DiagLinearOperator)
    op_z = lik(jnp.ones((7, 13), jnp.float32))
    assert isinstance(op_z, ZeroLinearOperator)

    # (F) diag matmul without ever densifying
    rhs = jnp.ones((N, 4), jnp.float32)
    assert jnp.allclose(op.matmul(rhs), cov_a @ rhs, rtol=1e-6, atol=0)

    print("KERNEL_OK")
</pallas_src>

<mosaic_0001>
module attributes {stable_mosaic.version = 11 : i64} {
  func.func @_diag_block_kernel(%arg0: i32, %arg1: i32, %arg2: memref<1x256xf32, #tpu.memory_space<vmem>>, %arg3: memref<256x256xf32, #tpu.memory_space<vmem>>) attributes {dimension_semantics = [#tpu.dimension_semantics<parallel>, #tpu.dimension_semantics<parallel>], iteration_bounds = array<i64: 1, 1>, scalar_prefetch = 0 : i64, scratch_operands = 0 : i64, tpu.core_type = #tpu.core_type<tc>, window_params = [{pipeline_mode = #tpu.pipeline_mode<synchronous>, transform_indices = @transform_0, window_bounds = array<i64: 1, 256>}, {transform_indices = @transform_1, window_bounds = array<i64: 256, 256>}]} {
    %0 = arith.cmpi ne, %arg0, %arg1 : i32
    %1 = arith.extui %0 : i1 to i32
    %c0_i32 = arith.constant 0 : i32
    %2 = arith.cmpi ne, %1, %c0_i32 : i32
    scf.if %2 {
      %cst = arith.constant 0.000000e+00 : f32
      %6 = vector.broadcast %cst : f32 to vector<256x256xf32>
      %c0 = arith.constant 0 : index
      %c0_1 = arith.constant 0 : index
      %7 = vector.load %arg3[%c0, %c0_1] : memref<256x256xf32, #tpu.memory_space<vmem>>, vector<256x256xf32>
      tpu.vector_store %arg3[%c0, %c0_1], %6 {strides = array<i32>} : memref<256x256xf32, #tpu.memory_space<vmem>>, vector<256x256xf32>,
    } else {
    }
    %3 = arith.cmpi eq, %arg0, %arg1 : i32
    %4 = arith.extui %3 : i1 to i32
    %c0_i32_0 = arith.constant 0 : i32
    %5 = arith.cmpi ne, %4, %c0_i32_0 : i32
    scf.if %5 {
      %c256_i32 = arith.constant 256 : i32
      %6 = arith.muli %arg0, %c256_i32 : i32
      %7 = tpu.assume_multiple %6, 256 : i32
      %c0 = arith.constant 0 : index
      %8 = arith.index_cast %7 : i32 to index
      %9 = vector.load %arg2[%c0, %8] : memref<1x256xf32, #tpu.memory_space<vmem>>, vector<1x256xf32>
      %10 = tpu.iota {dimensions = array<i32: 0>} : vector<256x256xi32>
      %11 = tpu.iota {dimensions = array<i32: 1>} : vector<256x256xi32>
      %12 = arith.cmpi eq, %10, %11 : vector<256x256xi32>
      %cst = arith.constant 0.000000e+00 : f32
      %13 = vector.shape_cast %9 : vector<1x256xf32> to vector<1x256xf32>
      %14 = vector.broadcast %13 : vector<1x256xf32> to vector<256x256xf32>
      %15 = vector.broadcast %cst : f32 to vector<256x256xf32>
      %16 = arith.select %12, %14, %15 : vector<256x256xi1>, vector<256x256xf32>
      %c0_1 = arith.constant 0 : index
      %c0_2 = arith.constant 0 : index
      %17 = vector.load %arg3[%c0_1, %c0_2] : memref<256x256xf32, #tpu.memory_space<vmem>>, vector<256x256xf32>
      tpu.vector_store %arg3[%c0_1, %c0_2], %16 {strides = array<i32>} : memref<256x256xf32, #tpu.memory_space<vmem>>, vector<256x256xf32>,
    } else {
    }
    return
  }
  func.func @transform_0(%arg0: i32, %arg1: i32) -> (i32, i32) {
    %c0_i32 = arith.constant 0 : i32
    %c0_i32_0 = arith.constant 0 : i32
    %c0_i32_1 = arith.constant 0 : i32
    return %c0_i32, %c0_i32_0 : i32, i32
  }
  func.func @transform_1(%arg0: i32, %arg1: i32) -> (i32, i32) {
    %c0_i32 = arith.constant 0 : i32
    return %arg0, %arg1 : i32, i32
  }
}

</mosaic_0001>

<bundles_post_ra>
// kernel: tpu_custom_call.1
= control target key start
LH: loop header
LB: loop body
LE: loop exit
PB: predicated region body
PF: predicated region fallthrough
CT: control target
= control target key end

     0   :  { %6 = vsyncpa [#allocation3], 0  ;;  %s555_s0 = inlined_call_operand.hbm [shape: f32[1,256], index: 0, kind: input, shape index: {}]   ;;  %s556_s1 = inlined_call_operand.hbm [shape: f32[256,256], index: 1, kind: output, shape index: {}]  }
   0x1   :  { %7 = vsyncpa [#allocation4], 0  ;;  %s408_s6 = smov [#allocation2]   ;;  %s360_s10 = scalar_lea.hbm %s555_s0, 32 }
   0x2   :  { %s14_s7 = sshll.u32 %s408_s6, 4  ;;  %p361_p0 = scmp.ne.s32.totalorder %s555_s0, %s360_s10  ;;  %s15_s7 = int_to_ptr.vmem [resolvable:$true] %s14_s7 }
   0x3   :  { %p364_p1 = scmp.lt.u32.totalorder %s360_s10, %s555_s0 }
   0x5   :  { %p366_p2 = pnand %p364_p1, %p361_p0 }
   0x7   :  { %369 = shalt.err (!%p366_p2)
}
   0x8   :  { %s370_s15 = scalar_lea.vmem %s15_s7, 32  ;;  %p375_p4 = scmp.lt.s32.totalorder %s15_s7, %s15_s7 }
   0x9   :  { %p371_p3 = scmp.ne.s32.totalorder %s15_s7, %s370_s15  ;;  %p376_p5 = scmp.lt.s32.totalorder %s370_s15, %s370_s15 }
   0xb   :  { %p377_p6 = por %p376_p5, %p375_p4 }
   0xd   :  { %p378_p7 = pnand %p377_p6, %p371_p3 }
   0xf   :  { %381 = shalt.err (!%p378_p7)
}
  0x10   :  { %17 = dma.hbm_to_vmem [thread:$0]  %s555_s0, 32, %s15_s7, [#allocation3]  }
  0x11   :  { %404 = dma.done.wait [#allocation3], 32  }
  0x12   :  { %405 = vsyncadd [#allocation3], 4294967264  ;;  %v98_v0 = vlaneseq  ;;  %v409_v1 = vmov 0.0   ;;  %v97_v13 = vld [vmem:[#allocation2] sm:$0x3]  ;;  %s410_s0 = smov [#allocation5]  }
  0x13   :  { %274 = vst [vmem:[#allocation5 + $0x8] sm:$0xff] %v409_v1  ;;  %276 = vst [vmem:[#allocation5 + $0x18] sm:$0xff] %v409_v1  ;;  %s342_s18 = sshll.u32 %s410_s0, 4  ;;  %s343_s18 = int_to_ptr.vmem [resolvable:$true] %s342_s18 }
  0x14   :  { %278 = vst [vmem:[#allocation5 + $0x28] sm:$0xff] %v409_v1  ;;  %280 = vst [vmem:[#allocation5 + $0x38] sm:$0xff] %v409_v1  ;;  %v435_v2 = vshrl.u32 %v98_v0, 7  ;;  %v437_v3 = vand.u32 127, %v98_v0  ;;  %s382_s19 = scalar_lea.vmem %s343_s18, 8192  ;;  %p387_p9 = scmp.lt.s32.totalorder %s343_s18, %s343_s18 }
  0x15   :  { %282 = vst [vmem:[#allocation5 + $0x48] sm:$0xff] %v409_v1  ;;  %284 = vst [vmem:[#allocation5 + $0x58] sm:$0xff] %v409_v1  ;;  %p383_p8 = scmp.ne.s32.totalorder %s343_s18, %s382_s19  ;;  %p388_p10 = scmp.lt.s32.totalorder %s382_s19, %s382_s19 }
  0x16   :  { %286 = vst [vmem:[#allocation5 + $0x68] sm:$0xff] %v409_v1  ;;  %288 = vst [vmem:[#allocation5 + $0x78] sm:$0xff] %v409_v1  ;;  %vm134_vm0 = vcmp.eq.s32.totalorder %v435_v2, %v437_v3  ;;  %v201_v4 = vsub.s32 0, %v435_v2  ;;  %v100_v5 = vadd.s32 8, %v435_v2  ;;  %v101_v6 = vadd.s32 16, %v435_v2 }
  0x17   :  { %290 = vst [vmem:[#allocation5 + $0x88] sm:$0xff] %v409_v1  ;;  %292 = vst [vmem:[#allocation5 + $0x98] sm:$0xff] %v409_v1  ;;  %v102_v7 = vadd.s32 24, %v435_v2  ;;  %v103_v8 = vadd.s32 32, %v435_v2  ;;  %v104_v9 = vadd.s32 40, %v435_v2  ;;  %v105_v10 = vadd.s32 48, %v435_v2  ;;  %p389_p11 = por %p388_p10, %p387_p9 }
  0x18   :  { %294 = vst [vmem:[#allocation5 + $0xa8] sm:$0xff] %v409_v1  ;;  %296 = vst [vmem:[#allocation5 + $0xb8] sm:$0xff] %v409_v1  ;;  %vm136_vm1 = vcmp.eq.s32.totalorder %v100_v5, %v437_v3  ;;  %vm138_vm2 = vcmp.eq.s32.totalorder %v101_v6, %v437_v3  ;;  %v106_v11 = vadd.s32 56, %v435_v2  ;;  %v107_v12 = vadd.s32 64, %v435_v2 }
  0x19   :  { %298 = vst [vmem:[#allocation5 + $0xc8] sm:$0xff] %v409_v1  ;;  %300 = vst [vmem:[#allocation5 + $0xd8] sm:$0xff] %v409_v1  ;;  %vm140_vm3 = vcmp.eq.s32.totalorder %v102_v7, %v437_v3  ;;  %vm142_vm4 = vcmp.eq.s32.totalorder %v103_v8, %v437_v3  ;;  %vm144_vm5 = vcmp.eq.s32.totalorder %v104_v9, %v437_v3  ;;  %v108_v15 = vadd.s32 72, %v435_v2  ;;  %p390_p12 = pnand %p389_p11, %p383_p8 }
  0x1a   :  { %302 = vst [vmem:[#allocation5 + $0xe8] sm:$0xff] %v409_v1  ;;  %304 = vst [vmem:[#allocation5 + $0xf8] sm:$0xff] %v409_v1  ;;  %vm146_vm6 = vcmp.eq.s32.totalorder %v105_v10, %v437_v3  ;;  %v202_v14 = vrot.slane %v97_v13, %v201_v4  ;;  %vm148_vm7 = vcmp.eq.s32.totalorder %v106_v11, %v437_v3  ;;  %v109_v16 = vadd.s32 80, %v435_v2 }
  0x1b   :  { %305 = vst [vmem:[#allocation5 + $0x100] sm:$0xff] %v409_v1  ;;  %307 = vst [vmem:[#allocation5 + $0x110] sm:$0xff] %v409_v1  ;;  %vm150_vm8 = vcmp.eq.s32.totalorder %v107_v12, %v437_v3  ;;  %v110_v17 = vadd.s32 88, %v435_v2  ;;  %v111_v18 = vadd.s32 96, %v435_v2  ;;  %v112_v19 = vadd.s32 104, %v435_v2 }
  0x1c   :  { %309 = vst [vmem:[#allocation5 + $0x120] sm:$0xff] %v409_v1  ;;  %311 = vst [vmem:[#allocation5 + $0x130] sm:$0xff] %v409_v1  ;;  %v209_v20 = vsel %vm134_vm0, %v202_v14, 0.0  ;;  %v211_v21 = vsel %vm136_vm1, %v202_v14, 0.0  ;;  %v213_v22 = vsel %vm138_vm2, %v202_v14, 0.0  ;;  %v215_v23 = vsel %vm140_vm3, %v202_v14, 0.0 }
  0x1d   :  { %313 = vst [vmem:[#allocation5 + $0x140] sm:$0xff] %v409_v1  ;;  %315 = vst [vmem:[#allocation5 + $0x150] sm:$0xff] %v409_v1  ;;  %v217_v24 = vsel %vm142_vm4, %v202_v14, 0.0  ;;  %v219_v25 = vsel %vm144_vm5, %v202_v14, 0.0  ;;  %v221_v26 = vsel %vm146_vm6, %v202_v14, 0.0  ;;  %v223_v27 = vsel %vm148_vm7, %v202_v14, 0.0 }
  0x1e   :  { %317 = vst [vmem:[#allocation5 + $0x160] sm:$0xff] %v409_v1  ;;  %319 = vst [vmem:[#allocation5 + $0x170] sm:$0xff] %v409_v1  ;;  %v225_v28 = vsel %vm150_vm8, %v202_v14, 0.0  ;;  %vm152_vm9 = vcmp.eq.s32.totalorder %v108_v15, %v437_v3  ;;  %vm154_vm10 = vcmp.eq.s32.totalorder %v109_v16, %v437_v3  ;;  %vm156_vm11 = vcmp.eq.s32.totalorder %v110_v17, %v437_v3 }
  0x1f   :  { %321 = vst [vmem:[#allocation5 + $0x180] sm:$0xff] %v409_v1  ;;  %323 = vst [vmem:[#allocation5 + $0x190] sm:$0xff] %v409_v1  ;;  %v227_v29 = vsel %vm152_vm9, %v202_v14, 0.0  ;;  %v229_v30 = vsel %vm154_vm10, %v202_v14, 0.0  ;;  %v231_v31 = vsel %vm156_vm11, %v202_v14, 0.0  ;;  %vm158_vm12 = vcmp.eq.s32.totalorder %v111_v18, %v437_v3 }
  0x20   :  { %325 = vst [vmem:[#allocation5 + $0x1a0] sm:$0xff] %v409_v1  ;;  %327 = vst [vmem:[#allocation5 + $0x1b0] sm:$0xff] %v409_v1  ;;  %v233_v32 = vsel %vm158_vm12, %v202_v14, 0.0  ;;  %vm160_vm13 = vcmp.eq.s32.totalorder %v112_v19, %v437_v3  ;;  %v113_v33 = vadd.s32 112, %v435_v2  ;;  %v114_v34 = vadd.s32 120, %v435_v2 }
  0x21   :  { %329 = vst [vmem:[#allocation5 + $0x1c0] sm:$0xff] %v409_v1  ;;  %331 = vst [vmem:[#allocation5 + $0x1d0] sm:$0xff] %v409_v1  ;;  %v235_v35 = vsel %vm160_vm13, %v202_v14, 0.0  ;;  %v115_v36 = vadd.s32 128, %v435_v2  ;;  %v489_v37 = vadd.s32 128, %v437_v3  ;;  %v205_v38 = vsub.s32 1, %v435_v2 }
  0x22   :  { %333 = vst [vmem:[#allocation5 + $0x1e0] sm:$0xff] %v409_v1  ;;  %335 = vst [vmem:[#allocation5 + $0x1f0] sm:$0xff] %v409_v1  ;;  %vm162_vm14 = vcmp.eq.s32.totalorder %v113_v33, %v437_v3  ;;  %vm164_vm15 = vcmp.eq.s32.totalorder %v114_v34, %v437_v3  ;;  %v116_v39 = vadd.s32 136, %v435_v2  ;;  %v117_v40 = vadd.s32 144, %v435_v2 }
  0x23   :  { %273 = vst [vmem:[#allocation5] sm:$0xff] %v209_v20  ;;  %275 = vst [vmem:[#allocation5 + $0x10] sm:$0xff] %v211_v21  ;;  %v237_v41 = vsel %vm162_vm14, %v202_v14, 0.0  ;;  %v239_v42 = vsel %vm164_vm15, %v202_v14, 0.0  ;;  %vm167_vm0 = vcmp.eq.s32.totalorder %v115_v36, %v489_v37  ;;  %v497_v43 = vrot.slane %v97_v13, %v205_v38 }
  0x24   :  { %277 = vst [vmem:[#allocation5 + $0x20] sm:$0xff] %v213_v22  ;;  %279 = vst [vmem:[#allocation5 + $0x30] sm:$0xff] %v215_v23  ;;  %vm169_vm1 = vcmp.eq.s32.totalorder %v116_v39, %v489_v37  ;;  %vm171_vm2 = vcmp.eq.s32.totalorder %v117_v40, %v489_v37  ;;  %v118_v44 = vadd.s32 152, %v435_v2  ;;  %v119_v45 = vadd.s32 160, %v435_v2 }
  0x25   :  { %281 = vst [vmem:[#allocation5 + $0x40] sm:$0xff] %v217_v24  ;;  %283 = vst [vmem:[#allocation5 + $0x50] sm:$0xff] %v219_v25  ;;  %v242_v46 = vsel %vm167_vm0, %v497_v43, 0.0  ;;  %v244_v47 = vsel %vm169_vm1, %v497_v43, 0.0  ;;  %v246_v48 = vsel %vm171_vm2, %v497_v43, 0.0  ;;  %v120_v49 = vadd.s32 168, %v435_v2 }
  0x26   :  { %285 = vst [vmem:[#allocation5 + $0x60] sm:$0xff] %v221_v26  ;;  %287 = vst [vmem:[#allocation5 + $0x70] sm:$0xff] %v223_v27  ;;  %vm173_vm3 = vcmp.eq.s32.totalorder %v118_v44, %v489_v37  ;;  %vm175_vm4 = vcmp.eq.s32.totalorder %v119_v45, %v489_v37  ;;  %v121_v50 = vadd.s32 176, %v435_v2  ;;  %v122_v51 = vadd.s32 184, %v435_v2 }
  0x27   :  { %289 = vst [vmem:[#allocation5 + $0x80] sm:$0xff] %v225_v28  ;;  %291 = vst [vmem:[#allocation5 + $0x90] sm:$0xff] %v227_v29  ;;  %v248_v52 = vsel %vm173_vm3, %v497_v43, 0.0  ;;  %v250_v53 = vsel %vm175_vm4, %v497_v43, 0.0  ;;  %vm177_vm5 = vcmp.eq.s32.totalorder %v120_v49, %v489_v37  ;;  %v123_v54 = vadd.s32 192, %v435_v2 }
  0x28   :  { %293 = vst [vmem:[#allocation5 + $0xa0] sm:$0xff] %v229_v30  ;;  %295 = vst [vmem:[#allocation5 + $0xb0] sm:$0xff] %v231_v31  ;;  %v252_v55 = vsel %vm177_vm5, %v497_v43, 0.0  ;;  %vm179_vm6 = vcmp.eq.s32.totalorder %v121_v50, %v489_v37  ;;  %vm181_vm7 = vcmp.eq.s32.totalorder %v122_v51, %v489_v37  ;;  %v124_v56 = vadd.s32 200, %v435_v2 }
  0x29   :  { %297 = vst [vmem:[#allocation5 + $0xc0] sm:$0xff] %v233_v32  ;;  %299 = vst [vmem:[#allocation5 + $0xd0] sm:$0xff] %v235_v35  ;;  %v254_v57 = vsel %vm179_vm6, %v497_v43, 0.0  ;;  %v256_v58 = vsel %vm181_vm7, %v497_v43, 0.0  ;;  %vm183_vm8 = vcmp.eq.s32.totalorder %v123_v54, %v489_v37  ;;  %v125_v59 = vadd.s32 208, %v435_v2 }
  0x2a   :  { %301 = vst [vmem:[#allocation5 + $0xe0] sm:$0xff] %v237_v41  ;;  %303 = vst [vmem:[#allocation5 + $0xf0] sm:$0xff] %v239_v42  ;;  %v258_v60 = vsel %vm183_vm8, %v497_v43, 0.0  ;;  %vm185_vm9 = vcmp.eq.s32.totalorder %v124_v56, %v489_v37  ;;  %v126_v61 = vadd.s32 216, %v435_v2  ;;  %v127_v62 = vadd.s32 224, %v435_v2 }
  0x2b   :  { %306 = vst [vmem:[#allocation5 + $0x108] sm:$0xff] %v242_v46  ;;  %308 = vst [vmem:[#allocation5 + $0x118] sm:$0xff] %v244_v47  ;;  %v260_v63 = vsel %vm185_vm9, %v497_v43, 0.0  ;;  %vm187_vm10 = vcmp.eq.s32.totalorder %v125_v59, %v489_v37  ;;  %v128_v0 = vadd.s32 232, %v435_v2  ;;  %v129_v1 = vadd.s32 240, %v435_v2 }
  0x2c   :  { %310 = vst [vmem:[#allocation5 + $0x128] sm:$0xff] %v246_v48  ;;  %312 = vst [vmem:[#allocation5 + $0x138] sm:$0xff] %v248_v52  ;;  %v262_v3 = vsel %vm187_vm10, %v497_v43, 0.0  ;;  %vm189_vm11 = vcmp.eq.s32.totalorder %v126_v61, %v489_v37  ;;  %vm191_vm12 = vcmp.eq.s32.totalorder %v127_v62, %v489_v37  ;;  %v130_v4 = vadd.s32 248, %v435_v2 }
  0x2d   :  { %314 = vst [vmem:[#allocation5 + $0x148] sm:$0xff] %v250_v53  ;;  %316 = vst [vmem:[#allocation5 + $0x158] sm:$0xff] %v252_v55  ;;  %v264_v5 = vsel %vm189_vm11, %v497_v43, 0.0  ;;  %v266_v6 = vsel %vm191_vm12, %v497_v43, 0.0  ;;  %vm193_vm13 = vcmp.eq.s32.totalorder %v128_v0, %v489_v37  ;;  %vm195_vm14 = vcmp.eq.s32.totalorder %v129_v1, %v489_v37 }
  0x2e   :  { %318 = vst [vmem:[#allocation5 + $0x168] sm:$0xff] %v254_v57  ;;  %320 = vst [vmem:[#allocation5 + $0x178] sm:$0xff] %v256_v58  ;;  %v268_v7 = vsel %vm193_vm13, %v497_v43, 0.0  ;;  %v270_v8 = vsel %vm195_vm14, %v497_v43, 0.0  ;;  %vm197_vm15 = vcmp.eq.s32.totalorder %v130_v4, %v489_v37 }
  0x2f   :  { %322 = vst [vmem:[#allocation5 + $0x188] sm:$0xff] %v258_v60  ;;  %324 = vst [vmem:[#allocation5 + $0x198] sm:$0xff] %v260_v63  ;;  %v272_v2 = vsel %vm197_vm15, %v497_v43, 0.0 }
  0x30   :  { %326 = vst [vmem:[#allocation5 + $0x1a8] sm:$0xff] %v262_v3  ;;  %328 = vst [vmem:[#allocation5 + $0x1b8] sm:$0xff] %v264_v5 }
  0x31   :  { %330 = vst [vmem:[#allocation5 + $0x1c8] sm:$0xff] %v266_v6  ;;  %332 = vst [vmem:[#allocation5 + $0x1d8] sm:$0xff] %v268_v7 }
  0x32   :  { %334 = vst [vmem:[#allocation5 + $0x1e8] sm:$0xff] %v270_v8  ;;  %336 = vst [vmem:[#allocation5 + $0x1f8] sm:$0xff] %v272_v2 }
  0x33   :  { %393 = shalt.err (!%p390_p12)
}
  0x34   :  { %s394_s22 = scalar_lea.hbm %s556_s1, 8192 }
  0x35   :  { %p395_p13 = scmp.ne.s32.totalorder %s556_s1, %s394_s22  ;;  %p398_p0 = scmp.lt.u32.totalorder %s394_s22, %s556_s1 }
  0x37   :  { %p400_p1 = pnand %p398_p0, %p395_p13 }
  0x39   :  { %403 = shalt.err (!%p400_p1)
}
  0x3a   :  { %s411_s27 = smov 256   ;;  %s412_s28 = smov 16  }
  0x3b   :  { %348 = dma.vmem_to_hbm [thread:$0]  %s343_s18, 8192, %s556_s1, [#allocation4], %s411_s27, %s411_s27, %s412_s28  }
  0x3c   :  { %406 = dma.done.wait [#allocation4], 8192  }
  0x3d   :  { %407 = vsyncadd [#allocation4], 4294959104 }
  0x3e   :  { %352 = vsyncpa [#allocation3], 1 }
  0x3f   :  { %353 = vsyncpa [#allocation4], 1 }

</bundles_post_ra>
